<compile_context>
chip_gen: v6e
topology: v6e:2x2x1
jax: 0.10.0
libtpu: 0.0.40
codegen_flags: <defaults>
</compile_context>

<pallas_src>
import functools

import jax
import jax.numpy as jnp
from jax.experimental import pallas as pl
from jax.experimental.pallas import tpu as pltpu


_NEG_PAD = -1e30  # fill for padded class columns (exp() underflows to 0)


def _round_up(x, m):
    return -(-x // m) * m


@functools.lru_cache(maxsize=None)
def _vmem_budgets():
    """(vmem_limit_bytes, tile_budget_bytes), per TPU generation."""
    vmem_bytes = 64 * 1024 * 1024  # conservative default (v7x-sized)
    try:
        info = pltpu.get_tpu_info()
        vmem_bytes = int(getattr(info, "vmem_capacity_bytes", vmem_bytes))
    except Exception:
        pass
    if vmem_bytes >= 128 * 1024 * 1024:          # v5e / v6e: 128 MiB VMEM
        return 96 * 1024 * 1024, 56 * 1024 * 1024
    return 32 * 1024 * 1024, 20 * 1024 * 1024    # v7x: 64 MiB phys / 32 scoped


def _sublane_multiple(itemsize):
    return max(8, 32 // max(1, itemsize))        # 8 f32, 16 bf16, 32 int8


def _choose_tile_n(N, C_pad, itemsize, budget):
    """Largest sublane-aligned row tile whose real VMEM footprint fits budget.

    Footprint per row (lane-padded layouts):
      logits tile  : 2 (double buffer) * C_pad * itemsize
      (tn,1) cols  : 512 B each (padded to 128 lanes); targets + sample
                     weights double-buffered, acc scratch + 'none' out block
                     -> ~6 * 512 B worst case.
    """
    sublane = _sublane_multiple(itemsize)
    per_row = 2 * C_pad * itemsize + 6 * 512
    t = max(sublane, (budget // per_row) // sublane * sublane)
    n_pad = _round_up(max(N, 1), sublane)
    return min(t, n_pad)


# ---------------------------------------------------------------------------
# In-kernel per-sample loss (stable log-softmax + mask-gather + masks)
# ---------------------------------------------------------------------------
def _per_sample_loss(x_ref, t_ref, iota_ref, cw_ref, w_ref, ignore_index):
    x = x_ref[...].astype(jnp.float32)                      # (tn, Cp)
    t = t_ref[...]                                          # (tn, 1) int32
    m = jnp.max(x, axis=-1, keepdims=True)                  # (tn, 1)
    lse = m + jnp.log(jnp.sum(jnp.exp(x - m), axis=-1, keepdims=True))
    mask = iota_ref[...] == t                               # (1,Cp)==(tn,1)->(tn,Cp)
    tgt = jnp.sum(jnp.where(mask, x, 0.0), axis=-1, keepdims=True)
    loss = lse - tgt
    if cw_ref is not None:
        cw = cw_ref[...].astype(jnp.float32)                # (1, Cp)
        cw_t = jnp.sum(jnp.where(mask, cw, 0.0), axis=-1, keepdims=True)
        loss = loss * cw_t
    loss = loss * (t != ignore_index).astype(jnp.float32)   # ignored rows -> 0
    if w_ref is not None:
        loss = loss * w_ref[...].astype(jnp.float32)
    return loss


# ---------------------------------------------------------------------------
# Kernels
# ---------------------------------------------------------------------------
def _reduce_kernel(*refs, ignore_index, has_cw, has_w):
    it = iter(refs)
    x_ref, t_ref, iota_ref = next(it), next(it), next(it)
    cw_ref = next(it) if has_cw else None
    w_ref = next(it) if has_w else None
    out_ref, acc_ref = next(it), next(it)

    i = pl.program_id(1)

    @pl.when(i == 0)
    def _():
        acc_ref[...] = jnp.zeros_like(acc_ref)

    acc_ref[...] += _per_sample_loss(x_ref, t_ref, iota_ref, cw_ref, w_ref,
                                     ignore_index)

    @pl.when(i == pl.num_programs(1) - 1)
    def _():
        out_ref[...] = jnp.broadcast_to(
            jnp.sum(acc_ref[...], keepdims=True), out_ref.shape)


def _none_kernel(*refs, ignore_index, loss_weight, has_cw, has_w):
    it = iter(refs)
    x_ref, t_ref, iota_ref = next(it), next(it), next(it)
    cw_ref = next(it) if has_cw else None
    w_ref = next(it) if has_w else None
    out_ref = next(it)
    out_ref[...] = _per_sample_loss(x_ref, t_ref, iota_ref, cw_ref, w_ref,
                                    ignore_index) * loss_weight
    # TODO(synk): for small C a lane-dense (1, tile_n) output slab would avoid
    # masked partial stores (~5-10%); skipped to avoid a sublane->lane relayout.


# ---------------------------------------------------------------------------
# Wrapper
# ---------------------------------------------------------------------------
def cross_entropy_loss(inputs, targets, weight=None, class_weight=None,
                       reduction="mean", loss_weight=1.0, ignore_index=-100,
                       tile_n=None):
    """Mirrors CrossEntropyLoss.forward for (N, C) logits + (N,) int labels.

    F.cross_entropy(reduction='none', weight=class_weight, ignore_index=...)
    * sample_weight, then torch.mean / torch.sum / identity, scaled by
    loss_weight.  'mean' divides by N (ignored rows stay in the denominator).
    """
    N, C = inputs.shape
    ignore_index = int(ignore_index)
    itemsize = jnp.dtype(inputs.dtype).itemsize
    vmem_limit, tile_budget = _vmem_budgets()

    C_pad = _round_up(C, 128)
    if tile_n is None:
        tile_n = _choose_tile_n(N, C_pad, itemsize, tile_budget)
    sublane = _sublane_multiple(itemsize)
    assert tile_n % sublane == 0, (tile_n, sublane)

    x = inputs
    if C_pad != C:
        x = jnp.pad(x, ((0, 0), (0, C_pad - C)), constant_values=_NEG_PAD)

    t2 = targets.astype(jnp.int32).reshape(N, 1)
    iota_row = jnp.arange(C_pad, dtype=jnp.int32).reshape(1, C_pad)

    has_cw = class_weight is not None
    has_w = weight is not None
    cw2 = class_weight.astype(jnp.float32).reshape(1, C) if has_cw else None
    if has_cw and C_pad != C:
        cw2 = jnp.pad(cw2, ((0, 0), (0, C_pad - C)))
    w2 = weight.astype(jnp.float32).reshape(N, 1) if has_w else None

    num_tiles = -(-N // tile_n)

    if reduction in ("mean", "sum"):
        # Leading "parallel" partial axis -> v7x megacore splits the reduction;
        # on single-TC chips it is just a second sequential pass (no harm).
        num_partials = 2 if num_tiles >= 2 else 1
        tiles_per_partial = -(-num_tiles // num_partials)
        num_tiles = num_partials * tiles_per_partial
    else:
        num_partials, tiles_per_partial = 1, num_tiles

    N_pad = num_tiles * tile_n
    if N_pad != N:
        pad = N_pad - N
        x = jnp.pad(x, ((0, pad), (0, 0)))
        # padded rows get ignore_index -> contribute exactly 0 loss
        t2 = jnp.pad(t2, ((0, pad), (0, 0)), constant_values=ignore_index)
        if has_w:
            w2 = jnp.pad(w2, ((0, pad), (0, 0)))

    if reduction in ("mean", "sum"):
        row_blk = lambda c, i: (c * tiles_per_partial + i, 0)
        const_blk = lambda c, i: (0, 0)
        in_specs = [pl.BlockSpec((tile_n, C_pad), row_blk),
                    pl.BlockSpec((tile_n, 1), row_blk),
                    pl.BlockSpec((1, C_pad), const_blk)]
        args = [x, t2, iota_row]
        if has_cw:
            in_specs.append(pl.BlockSpec((1, C_pad), const_blk))
            args.append(cw2)
        if has_w:
            in_specs.append(pl.BlockSpec((tile_n, 1), row_blk))
            args.append(w2)

        kernel = functools.partial(_reduce_kernel, ignore_index=ignore_index,
                                   has_cw=has_cw, has_w=has_w)
        out = pl.pallas_call(
            kernel,
            out_shape=jax.ShapeDtypeStruct((num_partials * 8, 128),
                                           jnp.float32),
            grid=(num_partials, tiles_per_partial),
            in_specs=in_specs,
            out_specs=pl.BlockSpec((8, 128), lambda c, i: (c, 0)),
            scratch_shapes=[pltpu.VMEM((tile_n, 1), jnp.float32)],
            compiler_params=pltpu.CompilerParams(
                dimension_semantics=("parallel", "arbitrary"),
                vmem_limit_bytes=vmem_limit),
        )(*args)
        scale = (float(loss_weight) / float(N) if reduction == "mean"
                 else float(loss_weight))
        return jnp.sum(out[::8, 0]) * scale

    elif reduction == "none":
        row_blk = lambda i: (i, 0)
        const_blk = lambda i: (0, 0)
        in_specs = [pl.BlockSpec((tile_n, C_pad), row_blk),
                    pl.BlockSpec((tile_n, 1), row_blk),
                    pl.BlockSpec((1, C_pad), const_blk)]
        args = [x, t2, iota_row]
        if has_cw:
            in_specs.append(pl.BlockSpec((1, C_pad), const_blk))
            args.append(cw2)
        if has_w:
            in_specs.append(pl.BlockSpec((tile_n, 1), row_blk))
            args.append(w2)

        kernel = functools.partial(_none_kernel, ignore_index=ignore_index,
                                   loss_weight=float(loss_weight),
                                   has_cw=has_cw, has_w=has_w)
        out = pl.pallas_call(
            kernel,
            out_shape=jax.ShapeDtypeStruct((N_pad, 1), jnp.float32),
            grid=(num_tiles,),
            in_specs=in_specs,
            out_specs=pl.BlockSpec((tile_n, 1), row_blk),
            compiler_params=pltpu.CompilerParams(
                dimension_semantics=("parallel",),
                vmem_limit_bytes=vmem_limit),
        )(*args)
        return out[:N, 0]
    else:
        raise ValueError(f"unknown reduction {reduction!r}")


# ---------------------------------------------------------------------------
# Pure-JAX reference (same semantics as the PyTorch module)
# ---------------------------------------------------------------------------
def _reference(inputs, targets, weight, class_weight, reduction,
               loss_weight, ignore_index):
    x = inputs.astype(jnp.float32)
    N, C = x.shape
    logp = jax.nn.log_softmax(x, axis=-1)
    valid = targets != ignore_index
    t_safe = jnp.where(valid, targets, 0)
    nll = -jnp.take_along_axis(logp, t_safe[:, None], axis=1)[:, 0]
    cw = jnp.ones((C,), jnp.float32) if class_weight is None else class_weight
    per = nll * cw[t_safe] * valid.astype(jnp.float32)
    if weight is not None:
        per = per * weight.astype(jnp.float32)
    if reduction == "mean":
        per = jnp.mean(per)
    elif reduction == "sum":
        per = jnp.sum(per)
    return loss_weight * per


if __name__ == "__main__":
    key = jax.random.PRNGKey(0)
    k1, k2, k3 = jax.random.split(key, 3)

    N, C = 64, 16
    logits = jax.random.normal(k1, (N, C), dtype=jnp.float32)
    targets = jax.random.randint(k2, (N,), 0, C, dtype=jnp.int32)
    targets = targets.at[3].set(-100).at[17].set(-100)   # ignored samples
    sample_w = jax.random.uniform(k3, (N,), dtype=jnp.float32,
                                  minval=0.5, maxval=1.5)
    class_w = jnp.linspace(0.5, 1.5, C, dtype=jnp.float32)
    loss_weight = 1.0

    # reduction='mean' (module default)
    loss = cross_entropy_loss(logits, targets, weight=sample_w,
                              class_weight=class_w, reduction="mean",
                              loss_weight=loss_weight)
    loss = jax.block_until_ready(loss)
    ref = _reference(logits, targets, sample_w, class_w, "mean",
                     loss_weight, -100)
    assert jnp.allclose(loss, ref, atol=1e-4, rtol=1e-4), (loss, ref)

    # reduction='sum'
    loss_s = cross_entropy_loss(logits, targets, weight=sample_w,
                                class_weight=class_w, reduction="sum",
                                loss_weight=loss_weight)
    loss_s = jax.block_until_ready(loss_s)
    ref_s = _reference(logits, targets, sample_w, class_w, "sum",
                       loss_weight, -100)
    assert jnp.allclose(loss_s, ref_s, atol=1e-3, rtol=1e-4), (loss_s, ref_s)

    # reduction='none'
    loss_n = cross_entropy_loss(logits, targets, weight=sample_w,
                                class_weight=class_w, reduction="none",
                                loss_weight=loss_weight)
    loss_n = jax.block_until_ready(loss_n)
    ref_n = _reference(logits, targets, sample_w, class_w, "none",
                       loss_weight, -100)
    assert jnp.allclose(loss_n, ref_n, atol=1e-4, rtol=1e-4)

    # non-multiple-of-tile row count + no class/sample weights (padding path,
    # specialized kernel without cw/w inputs)
    Np = 50
    loss_p = cross_entropy_loss(logits[:Np], targets[:Np], weight=None,
                                class_weight=None, reduction="mean",
                                loss_weight=0.5)
    loss_p = jax.block_until_ready(loss_p)
    ref_p = _reference(logits[:Np], targets[:Np], None, None, "mean",
                       0.5, -100)
    assert jnp.allclose(loss_p, ref_p, atol=1e-4, rtol=1e-4), (loss_p, ref_p)

    print("KERNEL_OK")
</pallas_src>

<mosaic_0001>
module attributes {stable_mosaic.version = 11 : i64} {
  func.func @_reduce_kernel(%arg0: i32, %arg1: i32, %arg2: memref<64x128xf32, #tpu.memory_space<vmem>>, %arg3: memref<64x1xi32, #tpu.memory_space<vmem>>, %arg4: memref<1x128xi32, #tpu.memory_space<vmem>>, %arg5: memref<1x128xf32, #tpu.memory_space<vmem>>, %arg6: memref<64x1xf32, #tpu.memory_space<vmem>>, %arg7: memref<8x128xf32, #tpu.memory_space<vmem>>, %arg8: memref<64x1xf32, #tpu.memory_space<vmem>>) attributes {dimension_semantics = [#tpu.dimension_semantics<parallel>, #tpu.dimension_semantics<arbitrary>], iteration_bounds = array<i64: 1, 1>, scalar_prefetch = 0 : i64, scratch_operands = 1 : i64, tpu.core_type = #tpu.core_type<tc>, window_params = [{transform_indices = @transform_0, window_bounds = array<i64: 64, 128>}, {transform_indices = @transform_1, window_bounds = array<i64: 64, 1>}, {pipeline_mode = #tpu.pipeline_mode<synchronous>, transform_indices = @transform_2, window_bounds = array<i64: 1, 128>}, {pipeline_mode = #tpu.pipeline_mode<synchronous>, transform_indices = @transform_3, window_bounds = array<i64: 1, 128>}, {transform_indices = @transform_4, window_bounds = array<i64: 64, 1>}, {transform_indices = @transform_5, window_bounds = array<i64: 8, 128>}]} {
    %c0_i32 = arith.constant 0 : i32
    %0 = arith.cmpi eq, %arg1, %c0_i32 : i32
    %1 = arith.extui %0 : i1 to i32
    %c0_i32_0 = arith.constant 0 : i32
    %2 = arith.cmpi ne, %1, %c0_i32_0 : i32
    scf.if %2 {
      %cst_21 = arith.constant 0.000000e+00 : f32
      %44 = vector.broadcast %cst_21 : f32 to vector<64x1xf32>
      %c0_22 = arith.constant 0 : index
      %c0_23 = arith.constant 0 : index
      %45 = vector.load %arg8[%c0_22, %c0_23] : memref<64x1xf32, #tpu.memory_space<vmem>>, vector<64x1xf32>
      tpu.vector_store %arg8[%c0_22, %c0_23], %44 {strides = array<i32>} : memref<64x1xf32, #tpu.memory_space<vmem>>, vector<64x1xf32>,
    } else {
    }
    %c0 = arith.constant 0 : index
    %c0_1 = arith.constant 0 : index
    %3 = vector.load %arg8[%c0, %c0_1] : memref<64x1xf32, #tpu.memory_space<vmem>>, vector<64x1xf32>
    %c0_2 = arith.constant 0 : index
    %c0_3 = arith.constant 0 : index
    %4 = vector.load %arg2[%c0_2, %c0_3] : memref<64x128xf32, #tpu.memory_space<vmem>>, vector<64x128xf32>
    %c0_4 = arith.constant 0 : index
    %c0_5 = arith.constant 0 : index
    %5 = vector.load %arg3[%c0_4, %c0_5] : memref<64x1xi32, #tpu.memory_space<vmem>>, vector<64x1xi32>
    %cst = arith.constant dense<0xFF800000> : vector<64xf32>
    %6 = vector.multi_reduction <maximumf>, %4, %cst [1] : vector<64x128xf32> to vector<64xf32>
    %7 = vector.shape_cast %6 : vector<64xf32> to vector<64x1xf32>
    %8 = vector.broadcast %7 : vector<64x1xf32> to vector<64x128xf32>
    %9 = arith.subf %4, %8 : vector<64x128xf32>
    %10 = math.exp %9 : vector<64x128xf32>
    %cst_6 = arith.constant dense<0.000000e+00> : vector<64xf32>
    %11 = vector.multi_reduction <add>, %10, %cst_6 [1] : vector<64x128xf32> to vector<64xf32>
    %12 = vector.shape_cast %11 : vector<64xf32> to vector<64x1xf32>
    %13 = math.log %12 : vector<64x1xf32>
    %14 = arith.addf %7, %13 : vector<64x1xf32>
    %c0_7 = arith.constant 0 : index
    %c0_8 = arith.constant 0 : index
    %15 = vector.load %arg4[%c0_7, %c0_8] : memref<1x128xi32, #tpu.memory_space<vmem>>, vector<1x128xi32>
    %16 = vector.broadcast %15 : vector<1x128xi32> to vector<64x128xi32>
    %17 = vector.broadcast %5 : vector<64x1xi32> to vector<64x128xi32>
    %18 = arith.cmpi eq, %16, %17 : vector<64x128xi32>
    %cst_9 = arith.constant 0.000000e+00 : f32
    %19 = vector.broadcast %cst_9 : f32 to vector<64x128xf32>
    %20 = arith.select %18, %4, %19 : vector<64x128xi1>, vector<64x128xf32>
    %cst_10 = arith.constant dense<0.000000e+00> : vector<64xf32>
    %21 = vector.multi_reduction <add>, %20, %cst_10 [1] : vector<64x128xf32> to vector<64xf32>
    %22 = vector.shape_cast %21 : vector<64xf32> to vector<64x1xf32>
    %23 = arith.subf %14, %22 : vector<64x1xf32>
    %c0_11 = arith.constant 0 : index
    %c0_12 = arith.constant 0 : index
    %24 = vector.load %arg5[%c0_11, %c0_12] : memref<1x128xf32, #tpu.memory_space<vmem>>, vector<1x128xf32>
    %cst_13 = arith.constant 0.000000e+00 : f32
    %25 = vector.shape_cast %24 : vector<1x128xf32> to vector<1x128xf32>
    %26 = vector.broadcast %25 : vector<1x128xf32> to vector<64x128xf32>
    %27 = vector.broadcast %cst_13 : f32 to vector<64x128xf32>
    %28 = arith.select %18, %26, %27 : vector<64x128xi1>, vector<64x128xf32>
    %cst_14 = arith.constant dense<0.000000e+00> : vector<64xf32>
    %29 = vector.multi_reduction <add>, %28, %cst_14 [1] : vector<64x128xf32> to vector<64xf32>
    %30 = vector.shape_cast %29 : vector<64xf32> to vector<64x1xf32>
    %31 = arith.mulf %23, %30 : vector<64x1xf32>
    %c-100_i32 = arith.constant -100 : i32
    %32 = vector.broadcast %c-100_i32 : i32 to vector<64x1xi32>
    %33 = arith.cmpi ne, %5, %32 : vector<64x1xi32>
    %34 = arith.extui %33 : vector<64x1xi1> to vector<64x1xi32>
    %35 = arith.sitofp %34 : vector<64x1xi32> to vector<64x1xf32>
    %36 = arith.mulf %31, %35 : vector<64x1xf32>
    %c0_15 = arith.constant 0 : index
    %c0_16 = arith.constant 0 : index
    %37 = vector.load %arg6[%c0_15, %c0_16] : memref<64x1xf32, #tpu.memory_space<vmem>>, vector<64x1xf32>
    %38 = arith.mulf %36, %37 : vector<64x1xf32>
    %39 = arith.addf %3, %38 : vector<64x1xf32>
    %c0_17 = arith.constant 0 : index
    %c0_18 = arith.constant 0 : index
    %40 = vector.load %arg8[%c0_17, %c0_18] : memref<64x1xf32, #tpu.memory_space<vmem>>, vector<64x1xf32>
    tpu.vector_store %arg8[%c0_17, %c0_18], %39 {strides = array<i32>} : memref<64x1xf32, #tpu.memory_space<vmem>>, vector<64x1xf32>,
    %c0_i32_19 = arith.constant 0 : i32
    %41 = arith.cmpi eq, %arg1, %c0_i32_19 : i32
    %42 = arith.extui %41 : i1 to i32
    %c0_i32_20 = arith.constant 0 : i32
    %43 = arith.cmpi ne, %42, %c0_i32_20 : i32
    scf.if %43 {
      %c0_21 = arith.constant 0 : index
      %c0_22 = arith.constant 0 : index
      %44 = vector.load %arg8[%c0_21, %c0_22] : memref<64x1xf32, #tpu.memory_space<vmem>>, vector<64x1xf32>
      %45 = vector.shape_cast %44 : vector<64x1xf32> to vector<1x64x1xf32>
      %cst_23 = arith.constant dense<0.000000e+00> : vector<1xf32>
      %46 = vector.multi_reduction <add>, %45, %cst_23 [1, 2] : vector<1x64x1xf32> to vector<1xf32>
      %47 = vector.shape_cast %46 : vector<1xf32> to vector<1x1x1xf32>
      %48 = vector.extract %47[0, 0, 0] : f32 from vector<1x1x1xf32>
      %49 = vector.broadcast %48 : f32 to vector<1x1xf32>
      %50 = vector.shape_cast %49 : vector<1x1xf32> to vector<1x1xf32>
      %51 = vector.broadcast %50 : vector<1x1xf32> to vector<8x128xf32>
      %c0_24 = arith.constant 0 : index
      %c0_25 = arith.constant 0 : index
      %52 = vector.load %arg7[%c0_24, %c0_25] : memref<8x128xf32, #tpu.memory_space<vmem>>, vector<8x128xf32>
      tpu.vector_store %arg7[%c0_24, %c0_25], %51 {strides = array<i32>} : memref<8x128xf32, #tpu.memory_space<vmem>>, vector<8x128xf32>,
    } else {
    }
    return
  }
  func.func @transform_0(%arg0: i32, %arg1: i32) -> (i32, i32) {
    %c1_i32 = arith.constant 1 : i32
    %0 = arith.muli %arg0, %c1_i32 : i32
    %1 = arith.addi %0, %arg1 : i32
    %c0_i32 = arith.constant 0 : i32
    %c0_i32_0 = arith.constant 0 : i32
    return %1, %c0_i32 : i32, i32
  }
  func.func @transform_1(%arg0: i32, %arg1: i32) -> (i32, i32) {
    %c1_i32 = arith.constant 1 : i32
    %0 = arith.muli %arg0, %c1_i32 : i32
    %1 = arith.addi %0, %arg1 : i32
    %c0_i32 = arith.constant 0 : i32
    %c0_i32_0 = arith.constant 0 : i32
    return %1, %c0_i32 : i32, i32
  }
  func.func @transform_2(%arg0: i32, %arg1: i32) -> (i32, i32) {
    %c0_i32 = arith.constant 0 : i32
    %c0_i32_0 = arith.constant 0 : i32
    %c0_i32_1 = arith.constant 0 : i32
    return %c0_i32, %c0_i32_0 : i32, i32
  }
  func.func @transform_3(%arg0: i32, %arg1: i32) -> (i32, i32) {
    %c0_i32 = arith.constant 0 : i32
    %c0_i32_0 = arith.constant 0 : i32
    %c0_i32_1 = arith.constant 0 : i32
    return %c0_i32, %c0_i32_0 : i32, i32
  }
  func.func @transform_4(%arg0: i32, %arg1: i32) -> (i32, i32) {
    %c1_i32 = arith.constant 1 : i32
    %0 = arith.muli %arg0, %c1_i32 : i32
    %1 = arith.addi %0, %arg1 : i32
    %c0_i32 = arith.constant 0 : i32
    %c0_i32_0 = arith.constant 0 : i32
    return %1, %c0_i32 : i32, i32
  }
  func.func @transform_5(%arg0: i32, %arg1: i32) -> (i32, i32) {
    %c0_i32 = arith.constant 0 : i32
    %c0_i32_0 = arith.constant 0 : i32
    return %arg0, %c0_i32 : i32, i32
  }
}

</mosaic_0001>

<bundles_post_ra>
// kernel: tpu_custom_call.1
= control target key start
LH: loop header
LB: loop body
LE: loop exit
PB: predicated region body
PF: predicated region fallthrough
CT: control target
= control target key end

     0   :  { %v517_v4 = vmov 0   ;;  %s843_s0 = inlined_call_operand.vmem [shape: f32[64,128], index: 0, kind: input, shape index: {}]   ;;  %s844_s1 = inlined_call_operand.vmem [shape: s32[64,1], index: 1, kind: input, shape index: {}]   ;;  %s845_s2 = inlined_call_operand.vmem [shape: s32[1,128], index: 2, kind: input, shape index: {}]   ;;  %s846_s3 = inlined_call_operand.vmem [shape: f32[1,128], index: 3, kind: input, shape index: {}]   ;;  %s847_s4 = inlined_call_operand.vmem [shape: f32[64,1], index: 4, kind: input, shape index: {}]   ;;  %s848_s5 = inlined_call_operand.hbm [shape: f32[8,128], index: 5, kind: output, shape index: {}]  }
   0x1   :  { %v553_v0 = vld [vmem:[%s843_s0 + $0x10] sm:$0xff]  ;;  %v558_v1 = vld [vmem:[%s843_s0] sm:$0xff]  ;;  %v565_v2 = vld [vmem:[%s843_s0 + $0x18] sm:$0xff]  ;;  %462 = vset.pattern.permute.xlu1 %v517_v4  ;;  %461 = vset.pattern.permute.xlu0 %v517_v4 }
   0x2   :  { %128 = vmax.xlane.f32.xlu1 %v553_v0  ;;  %124 = vmax.xlane.f32.xlu0 %v558_v1  ;;  %v109_v3 = vld [vmem:[%s843_s0 + $0x8] sm:$0xff]  ;;  %v579_v6 = vld [vmem:[%s843_s0 + $0x20] sm:$0xff] }
   0x3   :  { %v574_v5 = vld [vmem:[%s843_s0 + $0x28] sm:$0xff] }
   0x6   :  { %130 = vmax.xlane.f32.xlu1 %v565_v2  ;;  %126 = vmax.xlane.f32.xlu0 %v109_v3 }
   0x7   :  { %10 = vsyncpa [#allocation4], 0  ;;  %v586_v7 = vld [vmem:[%s843_s0 + $0x38] sm:$0xff]  ;;  %v591_v8 = vld [vmem:[%s843_s0 + $0x30] sm:$0xff]  ;;  %vm91_vm4 = vcmask 7168   ;;  %v518_v61 = vmov 0.0  }
   0x8   :  { %v598_v9 = vld [vmem:[%s844_s1 + $0x8] sm:$0xff]  ;;  %v604_v10 = vld [vmem:[%s844_s1 + $0x10] sm:$0xff]  ;;  %v609_v11 = vld [vmem:[%s844_s1] sm:$0xff]  ;;  %92 = vst.msk [vmem:[#allocation2] sm:$0xff] %vm91_vm4, %v518_v61 }
   0x9   :  { %v616_v12 = vld [vmem:[%s844_s1 + $0x18] sm:$0xff]  ;;  %v622_v13 = vld [vmem:[%s844_s1 + $0x20] sm:$0xff]  ;;  %v628_v14 = vld [vmem:[%s844_s1 + $0x28] sm:$0xff]  ;;  %93 = vst.msk [vmem:[#allocation2 + $0x8] sm:$0xff] %vm91_vm4, %v518_v61  ;;  %vm312_vm9 = vcmp.ne.s32.totalorder %v609_v11, 4294967196  ;;  %vm313_vm11 = vcmp.ne.s32.totalorder %v598_v9, 4294967196 }
   0xa   :  { %134 = vmax.xlane.f32.xlu1 %v574_v5  ;;  %132 = vmax.xlane.f32.xlu0 %v579_v6  ;;  %v634_v15 = vld [vmem:[%s844_s1 + $0x30] sm:$0xff]  ;;  %v640_v16 = vld [vmem:[%s844_s1 + $0x38] sm:$0xff]  ;;  %v665_v28 = vld [vmem:[%s845_s2] ss:$0 sm:$0xff]  ;;  %94 = vst.msk [vmem:[#allocation2 + $0x10] sm:$0xff] %vm91_vm4, %v518_v61  ;;  %vm315_vm10 = vcmp.ne.s32.totalorder %v616_v12, 4294967196 }
   0xb   :  { %v679_v36 = vld [vmem:[%s846_s3] ss:$0 sm:$0xff]  ;;  %95 = vst.msk [vmem:[#allocation2 + $0x18] sm:$0xff] %vm91_vm4, %v518_v61  ;;  %96 = vst.msk [vmem:[#allocation2 + $0x20] sm:$0xff] %vm91_vm4, %v518_v61  ;;  %vm314_vm12 = vcmp.ne.s32.totalorder %v604_v10, 4294967196  ;;  %vm316_vm13 = vcmp.ne.s32.totalorder %v622_v13, 4294967196 }
   0xc   :  { %97 = vst.msk [vmem:[#allocation2 + $0x28] sm:$0xff] %vm91_vm4, %v518_v61  ;;  %98 = vst.msk [vmem:[#allocation2 + $0x30] sm:$0xff] %vm91_vm4, %v518_v61  ;;  %vm319_vm14 = vcmp.ne.s32.totalorder %v640_v16, 4294967196  ;;  %vm317_vm15 = vcmp.ne.s32.totalorder %v628_v14, 4294967196 }
   0xd   :  { %99 = vst.msk [vmem:[#allocation2 + $0x38] sm:$0xff] %vm91_vm4, %v518_v61 }
   0xe   :  { %138 = vmax.xlane.f32.xlu1 %v586_v7  ;;  %136 = vmax.xlane.f32.xlu0 %v591_v8 }
  0x1f   :  { %213 = vperm.xlu1 %462, %v598_v9   ;;  %v451_v9 = vsel %vm315_vm10, 1.0, %v518_v61 }
  0x23   :  { %216 = vperm.xlu1 %462, %v604_v10   ;;  %v346_v10 = vld [vmem:[%s847_s4 + $0x10] sm:$0xff] }
  0x24   :  { %210 = vperm.xlu0 %461, %v609_v11   ;;  %v344_v11 = vld [vmem:[%s847_s4] sm:$0xff] }
  0x27   :  { %219 = vperm.xlu1 %462, %v616_v12  }
  0x2b   :  { %222 = vperm.xlu1 %462, %v622_v13   ;;  %v348_v13 = vld [vmem:[%s847_s4 + $0x20] sm:$0xff] }
  0x2f   :  { %225 = vperm.xlu1 %462, %v628_v14   ;;  %v351_v14 = vld [vmem:[%s847_s4 + $0x38] sm:$0xff] }
  0x33   :  { %228 = vperm.xlu1 %462, %v634_v15  }
  0x37   :  { %231 = vperm.xlu1 %462, %v640_v16   ;;  %v453_v16 = vsel %vm317_vm15, 1.0, %v518_v61 }
  0x8b   :  { %v643_v17 = vpop.xlane.xlu1 %128  ;;  %v645_v18 = vpop.xlane.xlu0 %124 }
  0x8c   :  { %v140_v22 = vsub.f32 %v558_v1, %v645_v18  ;;  %v142_v29 = vsub.f32 %v553_v0, %v643_v17 }
  0x8e   :  { %v148_v26 = vmul.f32 1.442695, %v140_v22  ;;  %v152_v37 = vmul.f32 1.442695, %v142_v29 }
  0x8f   :  { %v647_v19 = vpop.xlane.xlu1 %130  ;;  %v649_v20 = vpop.xlane.xlu0 %126 }
  0x90   :  { %v143_v24 = vsub.f32 %v565_v2, %v647_v19  ;;  %v141_v27 = vsub.f32 %v109_v3, %v649_v20  ;;  %463 = vpow2.f32 %v148_v26 }
  0x92   :  { %v154_v30 = vmul.f32 1.442695, %v143_v24  ;;  %v150_v33 = vmul.f32 1.442695, %v141_v27 }
  0x93   :  { %v651_v21 = vpop.xlane.xlu1 %134  ;;  %v655_v23 = vpop.xlane.xlu0 %132 }
  0x94   :  { %v145_v34 = vsub.f32 %v574_v5, %v651_v21  ;;  %465 = vpow2.f32 %v154_v30  ;;  %v144_v38 = vsub.f32 %v579_v6, %v655_v23 }
  0x95   :  { %467 = vpow2.f32 %v150_v33 }
  0x96   :  { %v158_v41 = vmul.f32 1.442695, %v145_v34  ;;  %469 = vpow2.f32 %v152_v37  ;;  %v156_v45 = vmul.f32 1.442695, %v144_v38 }
  0x97   :  { %v659_v25 = vpop.xlane.xlu1 %138  ;;  %v669_v31 = vpop.xlane.xlu0 %136 }
  0x98   :  { %v147_v42 = vsub.f32 %v586_v7, %v659_v25  ;;  %471 = vpow2.f32 %v158_v41  ;;  %v146_v48 = vsub.f32 %v591_v8, %v669_v31 }
  0x99   :  { %473 = vpow2.f32 %v156_v45 }
  0x9a   :  { %v162_v47 = vmul.f32 1.442695, %v147_v42  ;;  %v160_v51 = vmul.f32 1.442695, %v146_v48 }
  0x9b   :  { %v214_v32 = vpop.permute.xlu1 %213 }
  0x9c   :  { %vm234_vm0 = vcmp.eq.s32.totalorder %v665_v28, %v214_v32  ;;  %475 = vpow2.f32 %v162_v47 }
  0x9d   :  { %v242_v35 = vsel %vm234_vm0, %v109_v3, 0.0  ;;  %v464_v52 = vpop.eup %463  ;;  %v281_v53 = vsel %vm234_vm0, %v679_v36, 0.0  ;;  %477 = vpow2.f32 %v160_v51  ;;  %vm318_vm0 = vcmp.ne.s32.totalorder %v634_v15, 4294967196 }
  0x9e   :  { %251 = vadd.xlane.f32.xlu1 %v242_v35 }
  0x9f   :  { %v683_v39 = vpop.permute.xlu1 %216  ;;  %v211_v40 = vpop.permute.xlu0 %210 }
  0xa0   :  { %vm233_vm1 = vcmp.eq.s32.totalorder %v665_v28, %v211_v40  ;;  %vm235_vm2 = vcmp.eq.s32.totalorder %v665_v28, %v683_v39 }
  0xa1   :  { %v280_v43 = vsel %vm233_vm1, %v679_v36, 0.0  ;;  %v241_v44 = vsel %vm233_vm1, %v558_v1, 0.0  ;;  %v243_v50 = vsel %vm235_vm2, %v553_v0, 0.0  ;;  %v466_v54 = vpop.eup %465  ;;  %v282_v3 = vsel %vm235_vm2, %v679_v36, 0.0 }
  0xa2   :  { %288 = vadd.xlane.f32.xlu1 %v280_v43  ;;  %249 = vadd.xlane.f32.xlu0 %v241_v44  ;;  %v468_v55 = vpop.eup %467 }
  0xa3   :  { %v220_v46 = vpop.permute.xlu1 %219  ;;  %v470_v57 = vpop.eup %469 }
  0xa4   :  { %vm236_vm3 = vcmp.eq.s32.totalorder %v665_v28, %v220_v46 }
  0xa5   :  { %v244_v49 = vsel %vm236_vm3, %v565_v2, 0.0  ;;  %v472_v58 = vpop.eup %471  ;;  %v283_v22 = vsel %vm236_vm3, %v679_v36, 0.0 }
  0xa6   :  { %255 = vadd.xlane.f32.xlu1 %v244_v49  ;;  %253 = vadd.xlane.f32.xlu0 %v243_v50  ;;  %v474_v60 = vpop.eup %473  ;;  %v448_v50 = vsel %vm312_vm9, 1.0, %v518_v61 }
  0xa7   :  { %v223_v56 = vpop.permute.xlu1 %222 }
  0xa8   :  { %vm237_vm5 = vcmp.eq.s32.totalorder %v665_v28, %v223_v56 }
  0xa9   :  { %v476_v62 = vpop.eup %475  ;;  %v245_v1 = vsel %vm237_vm5, %v579_v6, 0.0  ;;  %v284_v24 = vsel %vm237_vm5, %v679_v36, 0.0 }
  0xaa   :  { %164 = vadd.xlane.f32.xlu1 %v464_v52  ;;  %290 = vadd.xlane.f32.xlu0 %v281_v53  ;;  %v478_v63 = vpop.eup %477 }
  0xab   :  { %v226_v59 = vpop.permute.xlu1 %225 }
  0xac   :  { %vm238_vm6 = vcmp.eq.s32.totalorder %v665_v28, %v226_v59 }
  0xad   :  { %v246_v2 = vsel %vm238_vm6, %v574_v5, 0.0 }
  0xae   :  { %170 = vadd.xlane.f32.xlu1 %v466_v54  ;;  %166 = vadd.xlane.f32.xlu0 %v468_v55 }
  0xaf   :  { %v229_v0 = vpop.permute.xlu1 %228 }
  0xb0   :  { %vm239_vm7 = vcmp.eq.s32.totalorder %v665_v28, %v229_v0 }
  0xb1   :  { %v247_v6 = vsel %vm239_vm7, %v591_v8, 0.0  ;;  %v285_v8 = vsel %vm238_vm6, %v679_v36, 0.0  ;;  %v286_v27 = vsel %vm239_vm7, %v679_v36, 0.0 }
  0xb2   :  { %174 = vadd.xlane.f32.xlu1 %v472_v58  ;;  %168 = vadd.xlane.f32.xlu0 %v470_v57 }
  0xb3   :  { %v232_v4 = vpop.permute.xlu1 %231 }
  0xb4   :  { %vm240_vm8 = vcmp.eq.s32.totalorder %v665_v28, %v232_v4 }
  0xb5   :  { %v248_v5 = vsel %vm240_vm8, %v586_v7, 0.0  ;;  %v287_v26 = vsel %vm240_vm8, %v679_v36, 0.0 }
  0xb6   :  { %178 = vadd.xlane.f32.xlu1 %v476_v62  ;;  %172 = vadd.xlane.f32.xlu0 %v474_v60  ;;  %v100_v62 = vld [vmem:[#allocation2] sm:$0xff] }
  0xba   :  { %257 = vadd.xlane.f32.xlu1 %v245_v1  ;;  %176 = vadd.xlane.f32.xlu0 %v478_v63 }
  0xbe   :  { %259 = vadd.xlane.f32.xlu1 %v246_v2  ;;  %292 = vadd.xlane.f32.xlu0 %v282_v3 }
  0xc2   :  { %261 = vadd.xlane.f32.xlu1 %v247_v6  ;;  %294 = vadd.xlane.f32.xlu0 %v283_v22 }
  0xc6   :  { %263 = vadd.xlane.f32.xlu1 %v248_v5  ;;  %296 = vadd.xlane.f32.xlu0 %v284_v24  ;;  %v347_v5 = vld [vmem:[%s847_s4 + $0x18] sm:$0xff] }
  0xca   :  { %302 = vadd.xlane.f32.xlu1 %v287_v26  ;;  %298 = vadd.xlane.f32.xlu0 %v285_v8  ;;  %v345_v26 = vld [vmem:[%s847_s4 + $0x8] sm:$0xff] }
  0xce   :  { %300 = vadd.xlane.f32.xlu0 %v286_v27 }
 0x127   :  { %v252_v7 = vpop.xlane.xlu1 %251 }
 0x12b   :  { %v289_v29 = vpop.xlane.xlu1 %288  ;;  %v250_v30 = vpop.xlane.xlu0 %249 }
 0x12f   :  { %v256_v32 = vpop.xlane.xlu1 %255  ;;  %v752_v33 = vpop.xlane.xlu0 %253 }
 0x133   :  { %v165_v34 = vpop.xlane.xlu1 %164  ;;  %v291_v35 = vpop.xlane.xlu0 %290 }
 0x134   :  { %479 = vlog2.f32 %v165_v34 }
 0x137   :  { %v171_v37 = vpop.xlane.xlu1 %170  ;;  %v167_v38 = vpop.xlane.xlu0 %166 }
 0x138   :  { %481 = vlog2.f32 %v171_v37  ;;  %v101_v37 = vld [vmem:[#allocation2 + $0x8] sm:$0xff] }
 0x139   :  { %483 = vlog2.f32 %v167_v38  ;;  %v450_v38 = vsel %vm314_vm12, 1.0, %v518_v61 }
 0x13b   :  { %v175_v39 = vpop.xlane.xlu1 %174  ;;  %v169_v40 = vpop.xlane.xlu0 %168 }
 0x13c   :  { %485 = vlog2.f32 %v175_v39 }
 0x13d   :  { %487 = vlog2.f32 %v169_v40 }
 0x13f   :  { %v179_v28 = vpop.xlane.xlu1 %178  ;;  %v173_v36 = vpop.xlane.xlu0 %172 }
 0x140   :  { %489 = vlog2.f32 %v179_v28 }
 0x141   :  { %v480_v41 = vpop.eup %479  ;;  %491 = vlog2.f32 %v173_v36 }
 0x142   :  { %v181_v42 = vmul.f32 0.6931472, %v480_v41  ;;  %v455_v41 = vsel %vm319_vm14, 1.0, %v518_v61 }
 0x143   :  { %v754_v43 = vpop.xlane.xlu1 %257  ;;  %v177_v44 = vpop.xlane.xlu0 %176 }
 0x144   :  { %v196_v45 = vadd.f32 %v181_v42, %v645_v18  ;;  %493 = vlog2.f32 %v177_v44 }
 0x145   :  { %v482_v46 = vpop.eup %481 }
 0x146   :  { %v484_v47 = vpop.eup %483  ;;  %v265_v48 = vsub.f32 %v196_v45, %v250_v30  ;;  %v187_v49 = vmul.f32 0.6931472, %v482_v46 }
 0x147   :  { %v183_v51 = vmul.f32 0.6931472, %v484_v47  ;;  %v759_v52 = vpop.xlane.xlu1 %259  ;;  %v293_v53 = vpop.xlane.xlu0 %292 }
 0x148   :  { %v304_v54 = vmul.f32 %v289_v29, %v265_v48  ;;  %v199_v55 = vadd.f32 %v187_v49, %v647_v19  ;;  %v449_v19 = vsel %vm313_vm11, 1.0, %v518_v61 }
 0x149   :  { %v486_v56 = vpop.eup %485  ;;  %v197_v18 = vadd.f32 %v183_v51, %v649_v20 }
 0x14a   :  { %v488_v57 = vpop.eup %487  ;;  %v336_v58 = vmul.f32 %v448_v50, %v304_v54  ;;  %v191_v59 = vmul.f32 0.6931472, %v486_v56  ;;  %v268_v60 = vsub.f32 %v199_v55, %v256_v32  ;;  %v103_v32 = vld [vmem:[#allocation2 + $0x18] sm:$0xff]  ;;  %v102_v50 = vld [vmem:[#allocation2 + $0x10] sm:$0xff] }
 0x14b   :  { %v266_v63 = vsub.f32 %v197_v18, %v252_v7  ;;  %v185_v0 = vmul.f32 0.6931472, %v488_v57  ;;  %v768_v1 = vpop.xlane.xlu1 %261  ;;  %v295_v2 = vpop.xlane.xlu0 %294 }
 0x14c   :  { %v352_v3 = vmul.f32 %v344_v11, %v336_v58  ;;  %v307_v20 = vmul.f32 %v295_v2, %v268_v60  ;;  %v201_v27 = vadd.f32 %v191_v59, %v651_v21  ;;  %v107_v59 = vld [vmem:[#allocation2 + $0x38] sm:$0xff]  ;;  %v105_v60 = vld [vmem:[#allocation2 + $0x28] sm:$0xff] }
 0x14d   :  { %v490_v4 = vpop.eup %489  ;;  %v305_v6 = vmul.f32 %v291_v35, %v266_v63  ;;  %v198_v22 = vadd.f32 %v185_v0, %v643_v17  ;;  %v454_v63 = vsel %vm318_vm0, 1.0, %v518_v61  ;;  %v104_v0 = vld [vmem:[#allocation2 + $0x20] sm:$0xff] }
 0x14e   :  { %v492_v12 = vpop.eup %491  ;;  %v360_v24 = vadd.f32 %v352_v3, %v100_v62  ;;  %v195_v8 = vmul.f32 0.6931472, %v490_v4  ;;  %v339_v7 = vmul.f32 %v451_v9, %v307_v20  ;;  %v270_v44 = vsub.f32 %v201_v27, %v759_v52  ;;  %v350_v3 = vld [vmem:[%s847_s4 + $0x30] sm:$0xff] }
 0x14f   :  { %v337_v29 = vmul.f32 %v449_v19, %v305_v6  ;;  %v189_v30 = vmul.f32 0.6931472, %v492_v12  ;;  %v267_v17 = vsub.f32 %v198_v22, %v752_v33  ;;  %v264_v34 = vpop.xlane.xlu1 %263  ;;  %v297_v35 = vpop.xlane.xlu0 %296  ;;  %v452_v52 = vsel %vm316_vm13, 1.0, %v518_v61 }
 0x150   :  { %369 = vst.msk [vmem:[#allocation2] sm:$0xff] %vm91_vm4, %v360_v24  ;;  %v355_v21 = vmul.f32 %v347_v5, %v339_v7  ;;  %v203_v39 = vadd.f32 %v195_v8, %v659_v25  ;;  %v106_v5 = vld [vmem:[#allocation2 + $0x30] sm:$0xff] }
 0x151   :  { %v494_v40 = vpop.eup %493  ;;  %v353_v28 = vmul.f32 %v345_v26, %v337_v29  ;;  %v200_v36 = vadd.f32 %v189_v30, %v655_v23  ;;  %v306_v33 = vmul.f32 %v293_v53, %v267_v17 }
 0x152   :  { %v193_v42 = vmul.f32 0.6931472, %v494_v40  ;;  %v363_v45 = vadd.f32 %v355_v21, %v103_v32  ;;  %v272_v46 = vsub.f32 %v203_v39, %v264_v34 }
 0x153   :  { %v361_v47 = vadd.f32 %v353_v28, %v101_v37  ;;  %v269_v25 = vsub.f32 %v200_v36, %v754_v43  ;;  %v338_v48 = vmul.f32 %v450_v38, %v306_v33  ;;  %v303_v49 = vpop.xlane.xlu1 %302  ;;  %v299_v23 = vpop.xlane.xlu0 %298 }
 0x154   :  { %v202_v51 = vadd.f32 %v193_v42, %v669_v31  ;;  %372 = vst.msk [vmem:[#allocation2 + $0x18] sm:$0xff] %vm91_vm4, %v363_v45  ;;  %v311_v53 = vmul.f32 %v303_v49, %v272_v46  ;;  %v309_v54 = vmul.f32 %v299_v23, %v270_v44  ;;  %v349_v31 = vld [vmem:[%s847_s4 + $0x28] sm:$0xff]  ;;  %s519_s4 = smov [#allocation3]  }
 0x155   :  { %370 = vst.msk [vmem:[#allocation2 + $0x8] sm:$0xff] %vm91_vm4, %v361_v47  ;;  %v354_v43 = vmul.f32 %v346_v10, %v338_v48  ;;  %v308_v55 = vmul.f32 %v297_v35, %v269_v25  ;;  %s420_s15 = sshll.u32 %s519_s4, 4  ;;  %s421_s15 = int_to_ptr.vmem [resolvable:$true] %s420_s15 }
 0x156   :  { %v271_v56 = vsub.f32 %v202_v51, %v768_v1  ;;  %v343_v11 = vmul.f32 %v455_v41, %v311_v53  ;;  %v341_v18 = vmul.f32 %v453_v16, %v309_v54  ;;  %s495_s17 = scalar_lea.vmem %s421_s15, 128  ;;  %p500_p1 = scmp.lt.s32.totalorder %s421_s15, %s421_s15 }
 0x157   :  { %v362_v57 = vadd.f32 %v354_v43, %v102_v50  ;;  %v340_v58 = vmul.f32 %v452_v52, %v308_v55  ;;  %v301_v62 = vpop.xlane.xlu0 %300  ;;  %v380_v61 = vld [vmem:[#allocation2] sm:$0xff]  ;;  %p496_p0 = scmp.ne.s32.totalorder %s421_s15, %s495_s17  ;;  %p501_p2 = scmp.lt.s32.totalorder %s495_s17, %s495_s17 }
 0x158   :  { %v359_v2 = vmul.f32 %v351_v14, %v343_v11  ;;  %v357_v9 = vmul.f32 %v349_v31, %v341_v18  ;;  %v310_v19 = vmul.f32 %v301_v62, %v271_v56  ;;  %v388_v8 = vsel %vm91_vm4, %v380_v61, 0.0 }
 0x159   :  { %371 = vst.msk [vmem:[#allocation2 + $0x10] sm:$0xff] %vm91_vm4, %v362_v57  ;;  %v356_v1 = vmul.f32 %v348_v13, %v340_v58  ;;  %p502_p3 = por %p501_p2, %p500_p1 }
 0x15a   :  { %v367_v20 = vadd.f32 %v359_v2, %v107_v59  ;;  %v365_v4 = vadd.f32 %v357_v9, %v105_v60  ;;  %v342_v6 = vmul.f32 %v454_v63, %v310_v19 }
 0x15b   :  { %v364_v22 = vadd.f32 %v356_v1, %v104_v0  ;;  %v383_v7 = vld [vmem:[#allocation2 + $0x18] sm:$0xff]  ;;  %p503_p4 = pnand %p502_p3, %p496_p0 }
 0x15c   :  { %376 = vst.msk [vmem:[#allocation2 + $0x38] sm:$0xff] %vm91_vm4, %v367_v20  ;;  %374 = vst.msk [vmem:[#allocation2 + $0x28] sm:$0xff] %vm91_vm4, %v365_v4  ;;  %v358_v15 = vmul.f32 %v350_v3, %v342_v6  ;;  %v381_v12 = vld [vmem:[#allocation2 + $0x8] sm:$0xff]  ;;  %v393_v32 = vsel %vm91_vm4, %v383_v7, 0.0 }
 0x15d   :  { %373 = vst.msk [vmem:[#allocation2 + $0x20] sm:$0xff] %vm91_vm4, %v364_v22  ;;  %v389_v24 = vsel %vm91_vm4, %v381_v12, 0.0 }
 0x15e   :  { %v366_v26 = vadd.f32 %v358_v15, %v106_v5  ;;  %v390_v29 = vadd.f32 %v389_v24, %v388_v8 }
 0x160   :  { %375 = vst.msk [vmem:[#allocation2 + $0x30] sm:$0xff] %vm91_vm4, %v366_v26  ;;  %v382_v27 = vld [vmem:[#allocation2 + $0x10] sm:$0xff] }
 0x161   :  { %v391_v30 = vsel %vm91_vm4, %v382_v27, 0.0 }
 0x162   :  { %v392_v17 = vadd.f32 %v391_v30, %v390_v29 }
 0x163   :  { %v385_v35 = vld [vmem:[#allocation2 + $0x28] sm:$0xff]  ;;  %v387_v28 = vld [vmem:[#allocation2 + $0x38] sm:$0xff] }
 0x164   :  { %v384_v34 = vld [vmem:[#allocation2 + $0x20] sm:$0xff]  ;;  %v394_v37 = vadd.f32 %v393_v32, %v392_v17  ;;  %v397_v40 = vsel %vm91_vm4, %v385_v35, 0.0  ;;  %v401_v42 = vsel %vm91_vm4, %v387_v28, 0.0 }
 0x165   :  { %v395_v38 = vsel %vm91_vm4, %v384_v34, 0.0 }
 0x166   :  { %v396_v21 = vadd.f32 %v395_v38, %v394_v37 }
 0x167   :  { %v386_v39 = vld [vmem:[#allocation2 + $0x30] sm:$0xff] }
 0x168   :  { %v398_v36 = vadd.f32 %v397_v40, %v396_v21  ;;  %v399_v33 = vsel %vm91_vm4, %v386_v39, 0.0 }
 0x16a   :  { %v400_v41 = vadd.f32 %v399_v33, %v398_v36 }
 0x16c   :  { %v402_v44 = vadd.f32 %v401_v42, %v400_v41 }
 0x16e   :  { %403 = vadd.xlane.f32.xlu0 %v402_v44 }
 0x1f7   :  { %v404_v10 = vpop.xlane.xlu0 %403 }
 0x1f8   :  { %v405_v45 = vrot.slane %v404_v10, 4 }
 0x1fa   :  { %v406_v46 = vadd.f32 %v405_v45, %v404_v10 }
 0x1fc   :  { %v407_v47 = vrot.slane %v406_v46, 2 }
 0x1fe   :  { %v408_v25 = vadd.f32 %v407_v47, %v406_v46 }
 0x200   :  { %v409_v48 = vrot.slane %v408_v25, 1 }
 0x202   :  { %v410_v49 = vadd.f32 %v409_v48, %v408_v25 }
 0x204   :  { %456 = vpush %v410_v49 }
 0x235   :  { %s457_s16 = spop %456 }
 0x236   :  { %v412_v23 = vstv %s457_s16 }
 0x237   :  { %413 = vst [vmem:[#allocation3] sm:$0xff] %v412_v23 }
 0x238   :  { %506 = shalt.err (!%p503_p4)
}
 0x239   :  { %423 = dma.vmem_to_hbm [thread:$0]  %s421_s15, 128, %s848_s5, [#allocation4]  }
 0x23a   :  { %515 = dma.done.wait [#allocation4], 128  }
 0x23b   :  { %516 = vsyncadd [#allocation4], 4294967168 }
 0x23c   :  { %427 = vsyncpa [#allocation4], 1 }

</bundles_post_ra>
